<compile_context>
chip_gen: v7x
topology: tpu7x:2x2x1
jax: 0.10.0
libtpu: 0.0.40
codegen_flags: <defaults>
</compile_context>

<pallas_src>
import functools
import math

import jax
import jax.numpy as jnp
from jax.experimental import pallas as pl
from jax.experimental.pallas import tpu as pltpu


def _round_up(x, m):
    return -(-int(x) // int(m)) * int(m)


def _joint_loss_kernel(j_ref, g_ref, w_ref, o_ref, *, loss):
    """Elementwise loss + per-sample segmented reduce.

    j_ref, g_ref : (TB, k*F) VMEM tiles in the caller's native dtype
    w_ref        : (k*F, k)  block-diagonal ones matrix (f32)
    o_ref        : (TB, k)   per-sample reduced loss (f32)
    """
    # Cast to f32 *before* subtracting so bf16 inputs keep f32 diff/accum
    # semantics (matches an f32 reference; more accurate than bf16 torch).
    a = j_ref[...].astype(jnp.float32)
    b = g_ref[...].astype(jnp.float32)
    d = a - b
    if loss == "l2":
        per_elem = d * d                 # MSELoss(reduction='none')
    else:                                # 'l1' (validated in the wrapper)
        per_elem = jnp.abs(d)            # L1Loss(reduction='none')

    # Segmented per-sample reduce on the MXU: (TB, k*F) @ (k*F, k) -> (TB, k).
    # NOTE: a partial last grid block reads OOB input rows whose VMEM contents
    # are undefined (possibly NaN/Inf).  This stays correct only because the
    # matmul contracts over *columns* (each output row depends solely on its
    # own input row) and the OOB output rows are dropped on writeback.
    # Do NOT add any cross-row (sublane) reduction here.
    o_ref[...] = jnp.dot(per_elem, w_ref[...],
                         preferred_element_type=jnp.float32)


def _plain_jax_joint_loss(joint_out, joint_gt, loss):
    d = joint_out.astype(jnp.float32) - joint_gt.astype(jnp.float32)
    per_elem = d * d if loss == "l2" else jnp.abs(d)
    return jnp.sum(per_elem, axis=(-1, -2))


def joint_loss(joint_out, joint_gt, loss="l2", *, block_rows=None,
               min_pallas_rows=512, use_pallas=None):
    """Pallas-backed equivalent of JointLoss.forward.

    Returns sum(loss_fn(joint_out, joint_gt), axis=[-1,-2]) as float32 with
    shape == joint_out.shape[:-2].
    """
    if loss not in ("l2", "l1"):
        raise ValueError(f"unsupported loss: {loss}")
    assert joint_out.shape == joint_gt.shape, "shape mismatch"
    assert joint_out.ndim >= 2, "need at least 2 trailing axes to reduce over"

    lead_shape = joint_out.shape[:-2]
    J, D = joint_out.shape[-2], joint_out.shape[-1]
    B = math.prod(lead_shape)            # empty lead_shape -> 1 (scalar result)
    F = J * D

    # Degenerate / tiny sizes: the Pallas kernel is pure launch overhead here,
    # and B == 0 or F == 0 is handled correctly by the fused JAX expression.
    go_pallas = (B > 0) and (F > 0)
    if use_pallas is None:
        go_pallas = go_pallas and (B >= min_pallas_rows)
    else:
        go_pallas = go_pallas and bool(use_pallas)
    if not go_pallas:
        return _plain_jax_joint_loss(joint_out, joint_gt, loss)

    # ---- lane packing factor --------------------------------------------
    # k samples per VMEM row; k = 128 // gcd(F, 128) makes k*F a multiple of
    # 128 (fully dense lanes).  k is a power of two, so halving until it
    # divides B always terminates; partially dense is still a win over k=1.
    k = 128 // math.gcd(F, 128)
    while k > 1 and B % k != 0:
        k //= 2
    b_rows = B // k
    cols = k * F

    # Lane-packed, contiguous views — free reshapes, no data movement.
    jo = joint_out.reshape(b_rows, cols)
    jg = joint_gt.reshape(b_rows, cols)

    # Block-diagonal ones matrix for the segmented (per-sample) MXU reduce:
    # W[c, s] = 1 iff column c belongs to sample s of the packed row.
    seg_of_col = jnp.arange(cols, dtype=jnp.int32) // F
    w = (seg_of_col[:, None]
         == jnp.arange(k, dtype=jnp.int32)[None, :]).astype(jnp.float32)

    # ---- padding-aware VMEM sizing ----------------------------------------
    padded_cols = _round_up(cols, 128)                  # lane padding
    padded_k = _round_up(k, 128)
    in_row_bytes = 2 * padded_cols * (jnp.dtype(joint_out.dtype).itemsize
                                      + jnp.dtype(joint_gt.dtype).itemsize)
    out_row_bytes = 2 * padded_k * 4                    # f32, double-buffered
    w_bytes = 2 * _round_up(cols, 8) * padded_k * 4     # resident ones matrix
    tile_budget = 24 * 1024 * 1024      # < half of v7x's 64 MiB physical VMEM
    vmem_limit = 32 * 1024 * 1024       # >= default scoped on v5e/v6e/v7x

    if 8 * (in_row_bytes + out_row_bytes) + w_bytes > tile_budget:
        # Pathologically wide rows (huge F): even a minimal tile would blow
        # the VMEM budget — let XLA handle it.
        return _plain_jax_joint_loss(joint_out, joint_gt, loss)

    tb = (tile_budget - w_bytes) // (in_row_bytes + out_row_bytes)
    tb = max(8, (tb // 8) * 8)                          # sublane-aligned

    # Guarantee >= 2 grid steps so v7x's two TensorCores both get work.
    tb = min(tb, _round_up(pl.cdiv(b_rows, 2), 8))
    if block_rows is not None:                          # user cap, in samples
        tb = min(tb, max(8, ((int(block_rows) // max(k, 1)) // 8) * 8))
    if tb >= b_rows:
        tb = b_rows                    # single full-array block (always legal)
    # else: tb is a multiple of 8 -> satisfies the (8, .) sublane rule; the
    # partial last block overhangs harmlessly (OOB rows dropped on writeback).

    grid = (pl.cdiv(b_rows, tb),)

    out = pl.pallas_call(
        functools.partial(_joint_loss_kernel, loss=loss),
        out_shape=jax.ShapeDtypeStruct((b_rows, k), jnp.float32),
        grid=grid,
        in_specs=[
            pl.BlockSpec((tb, cols), lambda i: (i, 0)),
            pl.BlockSpec((tb, cols), lambda i: (i, 0)),
            pl.BlockSpec((cols, k), lambda i: (0, 0)),   # resident ones matrix
        ],
        out_specs=pl.BlockSpec((tb, k), lambda i: (i, 0)),
        compiler_params=pltpu.CompilerParams(
            dimension_semantics=("parallel",),
            vmem_limit_bytes=vmem_limit),
    )(jo, jg, w)

    # (b_rows, k) row-major -> (B,) recovers the original batch order.
    return out.reshape(lead_shape)


if __name__ == "__main__":
    key = jax.random.PRNGKey(0)
    k1, k2 = jax.random.split(key)

    # Typical tiny joint-regression shape: falls through to the fused JAX path.
    jo_small = jax.random.normal(k1, (2, 16, 3), dtype=jnp.float32)
    jg_small = jax.random.normal(k2, (2, 16, 3), dtype=jnp.float32)
    loss_small = joint_loss(jo_small, jg_small, loss="l2")
    jax.block_until_ready(loss_small)
    ref_small = jnp.sum((jo_small - jg_small) ** 2, axis=(-1, -2))
    assert loss_small.shape == ref_small.shape == (2,)
    assert jnp.allclose(loss_small, ref_small, rtol=1e-5, atol=1e-5)

    # Force the Pallas kernel on a modest batch: B=256, F=48 -> k=8 packing,
    # b_rows=32, >=2 grid steps (exercises the multi-tile pipelined path).
    k3, k4 = jax.random.split(k2)
    jo = jax.random.normal(k3, (256, 16, 3), dtype=jnp.float32)
    jg = jax.random.normal(k4, (256, 16, 3), dtype=jnp.float32)
    loss_l2 = joint_loss(jo, jg, loss="l2", use_pallas=True)
    jax.block_until_ready(loss_l2)
    ref_l2 = jnp.sum((jo - jg) ** 2, axis=(-1, -2))
    assert loss_l2.shape == (256,)
    assert jnp.allclose(loss_l2, ref_l2, rtol=1e-5, atol=1e-5)

    # l1 branch with native bf16 inputs (HBM stays bf16, kernel casts to f32).
    jo_bf = jo.astype(jnp.bfloat16)
    jg_bf = jg.astype(jnp.bfloat16)
    loss_l1 = joint_loss(jo_bf, jg_bf, loss="l1", use_pallas=True)
    jax.block_until_ready(loss_l1)
    ref_l1 = jnp.sum(jnp.abs(jo_bf.astype(jnp.float32)
                             - jg_bf.astype(jnp.float32)), axis=(-1, -2))
    assert jnp.allclose(loss_l1, ref_l1, rtol=1e-5, atol=1e-5)

    # Odd batch (257): lane-packing falls back to k=1, and the last grid block
    # is partial (exercises the OOB-row-drop path).
    k5, k6 = jax.random.split(k4)
    jo_odd = jax.random.normal(k5, (257, 16, 3), dtype=jnp.float32)
    jg_odd = jax.random.normal(k6, (257, 16, 3), dtype=jnp.float32)
    loss_odd = joint_loss(jo_odd, jg_odd, loss="l2", use_pallas=True)
    jax.block_until_ready(loss_odd)
    ref_odd = jnp.sum((jo_odd - jg_odd) ** 2, axis=(-1, -2))
    assert loss_odd.shape == (257,)
    assert jnp.allclose(loss_odd, ref_odd, rtol=1e-5, atol=1e-5)

    # Explicit user block_rows cap still works (multi-tile, packed path).
    loss_grid = joint_loss(jo, jg, loss="l2", use_pallas=True, block_rows=128)
    jax.block_until_ready(loss_grid)
    assert jnp.allclose(loss_grid, ref_l2, rtol=1e-5, atol=1e-5)

    print("KERNEL_OK")
</pallas_src>

<mosaic_0001>
module attributes {stable_mosaic.version = 11 : i64} {
  func.func @_joint_loss_kernel(%arg0: i32, %arg1: memref<16x384xf32, #tpu.memory_space<vmem>>, %arg2: memref<16x384xf32, #tpu.memory_space<vmem>>, %arg3: memref<384x8xf32, #tpu.memory_space<vmem>>, %arg4: memref<16x8xf32, #tpu.memory_space<vmem>>) attributes {dimension_semantics = [#tpu.dimension_semantics<parallel>], iteration_bounds = array<i64: 2>, scalar_prefetch = 0 : i64, scratch_operands = 0 : i64, tpu.core_type = #tpu.core_type<tc>, window_params = [{transform_indices = @transform_0, window_bounds = array<i64: 16, 384>}, {transform_indices = @transform_1, window_bounds = array<i64: 16, 384>}, {pipeline_mode = #tpu.pipeline_mode<synchronous>, transform_indices = @transform_2, window_bounds = array<i64: 384, 8>}, {transform_indices = @transform_3, window_bounds = array<i64: 16, 8>}]} {
    %c0 = arith.constant 0 : index
    %c0_0 = arith.constant 0 : index
    %0 = vector.load %arg1[%c0, %c0_0] : memref<16x384xf32, #tpu.memory_space<vmem>>, vector<16x384xf32>
    %c0_1 = arith.constant 0 : index
    %c0_2 = arith.constant 0 : index
    %1 = vector.load %arg2[%c0_1, %c0_2] : memref<16x384xf32, #tpu.memory_space<vmem>>, vector<16x384xf32>
    %2 = arith.subf %0, %1 : vector<16x384xf32>
    %3 = arith.mulf %2, %2 : vector<16x384xf32>
    %c0_3 = arith.constant 0 : index
    %c0_4 = arith.constant 0 : index
    %4 = vector.load %arg3[%c0_3, %c0_4] : memref<384x8xf32, #tpu.memory_space<vmem>>, vector<384x8xf32>
    %cst = arith.constant dense<0.000000e+00> : vector<16x8xf32>
    %5 = tpu.matmul %3, %4, %cst {dimension_numbers = #tpu.dot_dimension_numbers<[1], [0], [0], [1], [0, 0, 1, 1], [], []>} : vector<16x384xf32>, vector<384x8xf32>, vector<16x8xf32> -> vector<16x8xf32>
    %c0_5 = arith.constant 0 : index
    %c0_6 = arith.constant 0 : index
    %6 = vector.load %arg4[%c0_5, %c0_6] : memref<16x8xf32, #tpu.memory_space<vmem>>, vector<16x8xf32>
    tpu.vector_store %arg4[%c0_5, %c0_6], %5 {strides = array<i32>} : memref<16x8xf32, #tpu.memory_space<vmem>>, vector<16x8xf32>,
    return
  }
  func.func @transform_0(%arg0: i32) -> (i32, i32) {
    %c0_i32 = arith.constant 0 : i32
    %c0_i32_0 = arith.constant 0 : i32
    return %arg0, %c0_i32 : i32, i32
  }
  func.func @transform_1(%arg0: i32) -> (i32, i32) {
    %c0_i32 = arith.constant 0 : i32
    %c0_i32_0 = arith.constant 0 : i32
    return %arg0, %c0_i32 : i32, i32
  }
  func.func @transform_2(%arg0: i32) -> (i32, i32) {
    %c0_i32 = arith.constant 0 : i32
    %c0_i32_0 = arith.constant 0 : i32
    %c0_i32_1 = arith.constant 0 : i32
    return %c0_i32, %c0_i32_0 : i32, i32
  }
  func.func @transform_3(%arg0: i32) -> (i32, i32) {
    %c0_i32 = arith.constant 0 : i32
    %c0_i32_0 = arith.constant 0 : i32
    return %arg0, %c0_i32 : i32, i32
  }
}

</mosaic_0001>

<bundles_post_ra>
// kernel: tpu_custom_call.1
= control target key start
LH: loop header
LB: loop body
LE: loop exit
PB: predicated region body
PF: predicated region fallthrough
CT: control target
= control target key end

     0   :  { %s700_s12 = smov 0   ;;  %s885_s0 = inlined_call_operand.vmem [shape: f32[32,384], index: 0, kind: input, shape index: {}]   ;;  %s886_s1 = inlined_call_operand.vmem [shape: f32[32,384], index: 1, kind: input, shape index: {}]   ;;  %s887_s2 = inlined_call_operand.vmem [shape: f32[384,8], index: 2, kind: input, shape index: {}]   ;;  %s888_s3 = inlined_call_operand.vmem [shape: f32[32,8], index: 3, kind: output, shape index: {}]  }
   0x1 LB: > { %s495_s13 = sadd.s32 4294967295, %s678_s12   ;;  %p499_p0 = scmp.ge.s32.totalorder %s678_s12, 1  ;;  %s678_s12 = sphi %s700_s12, %s13_s12  }
   0x2   : > { %p151_p1 = scmp.lt.s32.totalorder %s678_s12, 3 }
   0x4   : > { %p152_p2 = pnand %p499_p0, %p151_p1 }
   0x5   : > { %v242_v0 = vld [vmem:[%s887_s2 + $0x80] sm:$0xff] (!%p152_p2)  ;;  %v243_v1 = vld [vmem:[%s887_s2 + $0x88] sm:$0xff] (!%p152_p2)  ;;  %s500_s20 = sshll.u32 (!%p152_p2), %s495_s13, 1  ;;  %v244_v9 = vld [vmem:[%s887_s2 + $0x90] sm:$0xff] (!%p152_p2)  ;;  %vm424_vm0 = vcmask (!%p152_p2), 64512  }
   0x6   : > { %155 = sbr.rel (%p152_p2) target bundleno = 262 (0x106), region = 32  ;;  %v226_v2 = vld [vmem:[%s887_s2] sm:$0xff] (!%p152_p2)  ;;  %v599_v3 = vpack.c.bf16 (!%p152_p2), %v243_v1, %v242_v0  ;;  %v227_v4 = vld [vmem:[%s887_s2 + $0x8] sm:$0xff] (!%p152_p2)  ;;  %p183_p3 = scmp.lt.s32.totalorder (!%p152_p2), %s500_s20, 3  ;;  %v245_v10 = vld [vmem:[%s887_s2 + $0x98] sm:$0xff] (!%p152_p2) }
   0x7   : > { %v258_v5 = vld [vmem:[%s887_s2 + $0x100] sm:$0xff] (!%p152_p2)  ;;  %v259_v6 = vld [vmem:[%s887_s2 + $0x108] sm:$0xff] (!%p152_p2)  ;;  %v601_v7 = vpack.c.bf16 (!%p152_p2), %v227_v4, %v226_v2  ;;  %v228_v11 = vld [vmem:[%s887_s2 + $0x10] sm:$0xff] (!%p152_p2)  ;;  %v603_v12 = vpack.c.bf16 (!%p152_p2), %v245_v10, %v244_v9 }
   0x8   : > { %v631_v8 = vpack.c.bf16 (!%p152_p2), %v259_v6, %v258_v5  ;;  %600 = vmatprep.subr.bf16.mxu0 (!%p152_p2), %v599_v3  ;;  %v229_v13 = vld [vmem:[%s887_s2 + $0x18] sm:$0xff] (!%p152_p2)  ;;  %v260_v14 = vld [vmem:[%s887_s2 + $0x110] sm:$0xff] (!%p152_p2)  ;;  %v246_v18 = vld [vmem:[%s887_s2 + $0xa0] sm:$0xff] (!%p152_p2) }
   0x9   : > { %v261_v15 = vld [vmem:[%s887_s2 + $0x118] sm:$0xff] (!%p152_p2)  ;;  %602 = vmatpush3.bf16.msra.mxu0 (!%p152_p2), %v601_v7  ;;  %v605_v16 = vpack.c.bf16 (!%p152_p2), %v229_v13, %v228_v11  ;;  %v247_v19 = vld [vmem:[%s887_s2 + $0xa8] sm:$0xff] (!%p152_p2)  ;;  %v230_v20 = vld [vmem:[%s887_s2 + $0x20] sm:$0xff] (!%p152_p2) }
   0xa   : > { %632 = vmatprep.subr.bf16.mxu1 (!%p152_p2), %v631_v8  ;;  %v635_v17 = vpack.c.bf16 (!%p152_p2), %v261_v15, %v260_v14  ;;  %604 = vmatprep.subr.bf16.mxu0 (!%p152_p2), %v603_v12  ;;  %v607_v21 = vpack.c.bf16 (!%p152_p2), %v247_v19, %v246_v18  ;;  %v231_v22 = vld [vmem:[%s887_s2 + $0x28] sm:$0xff] (!%p152_p2)  ;;  %v262_v23 = vld [vmem:[%s887_s2 + $0x120] sm:$0xff] (!%p152_p2)  ;;  %v248_v26 = vld [vmem:[%s887_s2 + $0xb0] sm:$0xff] (!%p152_p2) }
   0xb   : > { %634 = vmatpush3.bf16.msra.mxu1 (!%p152_p2), %v631_v8  ;;  %v263_v24 = vld [vmem:[%s887_s2 + $0x128] sm:$0xff] (!%p152_p2)  ;;  %v249_v27 = vld [vmem:[%s887_s2 + $0xb8] sm:$0xff] (!%p152_p2)  ;;  %v264_v28 = vld [vmem:[%s887_s2 + $0x130] sm:$0xff] (!%p152_p2)  ;;  %v609_v30 = vpack.c.bf16 (!%p152_p2), %v231_v22, %v230_v20 }
   0xc   : > { %636 = vmatprep.subr.bf16.mxu1 (!%p152_p2), %v635_v17  ;;  %v639_v25 = vpack.c.bf16 (!%p152_p2), %v263_v24, %v262_v23  ;;  %v265_v29 = vld [vmem:[%s887_s2 + $0x138] sm:$0xff] (!%p152_p2)  ;;  %v611_v31 = vpack.c.bf16 (!%p152_p2), %v249_v27, %v248_v26  ;;  %v232_v32 = vld [vmem:[%s887_s2 + $0x30] sm:$0xff] (!%p152_p2)  ;;  %v250_v35 = vld [vmem:[%s887_s2 + $0xc0] sm:$0xff] (!%p152_p2) }
   0xd   : > { %s890_s20 = smov (!%p183_p3, %s500_s20), 3  ;;  %606 = vmatpush3.bf16.msra.mxu0 %v605_v16  ;;  %v233_v33 = vld [vmem:[%s887_s2 + $0x38] sm:$0xff]  ;;  %v643_v34 = vpack.c.bf16 %v265_v29, %v264_v28  ;;  %v251_v36 = vld [vmem:[%s887_s2 + $0xc8] sm:$0xff]  ;;  %v266_v37 = vld [vmem:[%s887_s2 + $0x140] sm:$0xff] }
   0xe   : > { %608 = vmatprep.subr.bf16.mxu0 %v607_v21  ;;  %s663_s11 = smul.u32 24, %s890_s20  ;;  %v267_v38 = vld [vmem:[%s887_s2 + $0x148] sm:$0xff]  ;;  %v613_v39 = vpack.c.bf16 %v233_v33, %v232_v32  ;;  %v615_v40 = vpack.c.bf16 %v251_v36, %v250_v35  ;;  %v234_v41 = vld [vmem:[%s887_s2 + $0x40] sm:$0xff]  ;;  %v252_v44 = vld [vmem:[%s887_s2 + $0xd0] sm:$0xff]  ;;  %s505_s19 = sshll.u32 %s890_s20, 3 }
   0xf   : > { %638 = vmatpush3.bf16.msra.mxu1 %v635_v17  ;;  %v235_v42 = vld [vmem:[%s887_s2 + $0x48] sm:$0xff]  ;;  %v647_v43 = vpack.c.bf16 %v267_v38, %v266_v37  ;;  %v253_v45 = vld [vmem:[%s887_s2 + $0xd8] sm:$0xff]  ;;  %v268_v46 = vld [vmem:[%s887_s2 + $0x150] sm:$0xff]  ;;  %s200_s21 = scalar_lea.vmem %s888_s3, %s505_s19 }
  0x10   : > { %640 = vmatprep.subr.bf16.mxu1 %v639_v25  ;;  %s805_s28 = scalar_lea.vmem %s885_s0, %s663_s11  ;;  %s810_s4 = scalar_lea.vmem %s886_s1, %s663_s11  ;;  %v269_v47 = vld [vmem:[%s887_s2 + $0x158] sm:$0xff]  ;;  %v617_v48 = vpack.c.bf16 %v235_v42, %v234_v41  ;;  %v236_v49 = vld [vmem:[%s887_s2 + $0x50] sm:$0xff]  ;;  %v619_v52 = vpack.c.bf16 %v253_v45, %v252_v44  ;;  %v254_v58 = vld [vmem:[%s887_s2 + $0xe0] sm:$0xff] }
  0x11   : > { %610 = vmatpush3.bf16.msra.mxu0 %v609_v30  ;;  %v203_v50 = vld [vmem:[%s805_s28 + $0x8] sm:$0xff]  ;;  %v237_v53 = vld [vmem:[%s887_s2 + $0x58] sm:$0xff]  ;;  %v204_v55 = vld [vmem:[%s805_s28 + $0x10] sm:$0xff]  ;;  %v651_v57 = vpack.c.bf16 %v269_v47, %v268_v46 }
  0x12   : > { %612 = vmatprep.subr.bf16.mxu0 %v611_v31  ;;  %v209_v51 = vld [vmem:[%s810_s4 + $0x8] sm:$0xff]  ;;  %v210_v56 = vld [vmem:[%s810_s4 + $0x10] sm:$0xff]  ;;  %v270_v61 = vld [vmem:[%s887_s2 + $0x160] sm:$0xff]  ;;  %v621_v0 = vpack.c.bf16 %v237_v53, %v236_v49 }
  0x13   : > { %642 = vmatpush3.bf16.msra.mxu1 %v639_v25  ;;  %v215_v54 = vsub.f32 %v203_v50, %v209_v51  ;;  %v255_v59 = vld [vmem:[%s887_s2 + $0xe8] sm:$0xff]  ;;  %v216_v60 = vsub.f32 %v204_v55, %v210_v56  ;;  %v238_v3 = vld [vmem:[%s887_s2 + $0x60] sm:$0xff]  ;;  %v256_v6 = vld [vmem:[%s887_s2 + $0xf0] sm:$0xff] }
  0x14   : > { %644 = vmatprep.subr.bf16.mxu1 %v643_v34  ;;  %v271_v62 = vld [vmem:[%s887_s2 + $0x168] sm:$0xff]  ;;  %v623_v2 = vpack.c.bf16 %v255_v59, %v254_v58  ;;  %v257_v7 = vld [vmem:[%s887_s2 + $0xf8] sm:$0xff]  ;;  %v240_v8 = vld [vmem:[%s887_s2 + $0x70] sm:$0xff] }
  0x15   : > { %614 = vmatpush3.bf16.msra.mxu0 %v613_v39  ;;  %v221_v63 = vmul.f32 %v215_v54, %v215_v54  ;;  %v222_v1 = vmul.f32 %v216_v60, %v216_v60  ;;  %v239_v4 = vld [vmem:[%s887_s2 + $0x68] sm:$0xff]  ;;  %v655_v5 = vpack.c.bf16 %v271_v62, %v270_v61  ;;  %v241_v9 = vld [vmem:[%s887_s2 + $0x78] sm:$0xff]  ;;  %v272_v10 = vld [vmem:[%s887_s2 + $0x170] sm:$0xff]  ;;  %v627_v16 = vpack.c.bf16 %v257_v7, %v256_v6 }
  0x16   : > { %616 = vmatprep.subr.bf16.mxu0 %v615_v40  ;;  %v273_v11 = vld [vmem:[%s887_s2 + $0x178] sm:$0xff]  ;;  %v625_v12 = vpack.c.bf16 %v239_v4, %v238_v3  ;;  %v202_v13 = vld [vmem:[%s805_s28] sm:$0xff]  ;;  %v207_v15 = vld [vmem:[%s805_s28 + $0x28] sm:$0xff]  ;;  %v629_v22 = vpack.c.bf16 %v241_v9, %v240_v8 }
  0x17   : > { %646 = vmatpush3.bf16.msra.mxu1 %v643_v34  ;;  %338 = vmatprep.mubr.f32.mxu0 %v221_v63  ;;  %v208_v14 = vld [vmem:[%s810_s4] sm:$0xff]  ;;  %v213_v17 = vld [vmem:[%s810_s4 + $0x28] sm:$0xff]  ;;  %v659_v20 = vpack.c.bf16 %v273_v11, %v272_v10  ;;  %v205_v25 = vld [vmem:[%s805_s28 + $0x18] sm:$0xff] }
  0x18   : > { %648 = vmatprep.subr.bf16.mxu1 %v647_v43  ;;  %596 = vmatprep.mubr.f32.mxu1 %v222_v1  ;;  %v206_v18 = vld [vmem:[%s805_s28 + $0x20] sm:$0xff]  ;;  %v214_v21 = vsub.f32 %v202_v13, %v208_v14  ;;  %v219_v23 = vsub.f32 %v207_v15, %v213_v17  ;;  %v211_v26 = vld [vmem:[%s810_s4 + $0x18] sm:$0xff] }
  0x19   : > { %618 = vmatpush3.bf16.msra.mxu0 %v617_v48  ;;  %v212_v19 = vld [vmem:[%s810_s4 + $0x20] sm:$0xff]  ;;  %v217_v28 = vsub.f32 %v205_v25, %v211_v26 }
  0x1a   : > { %620 = vmatprep.subr.bf16.mxu0 %v619_v52  ;;  %v218_v24 = vsub.f32 %v206_v18, %v212_v19  ;;  %v220_v27 = vmul.f32 %v214_v21, %v214_v21  ;;  %v225_v29 = vmul.f32 %v219_v23, %v219_v23 }
  0x1b   : > { %650 = vmatpush3.bf16.msra.mxu1 %v647_v43  ;;  %v223_v31 = vmul.f32 %v217_v28, %v217_v28 }
  0x1c   : > { %652 = vmatprep.subr.bf16.mxu1 %v651_v57  ;;  %v224_v30 = vmul.f32 %v218_v24, %v218_v24 }
  0x1d   : > { %622 = vmatpush3.bf16.msra.mxu0 %v621_v0 }
  0x1e   : > { %624 = vmatprep.subr.bf16.mxu0 %v623_v2 }
  0x1f   : > { %654 = vmatpush3.bf16.msra.mxu1 %v651_v57 }
  0x20   : > { %656 = vmatprep.subr.bf16.mxu1 %v655_v5 }
  0x21   : > { %626 = vmatpush3.bf16.msra.mxu0 %v625_v12 }
  0x22   : > { %628 = vmatprep.subr.bf16.mxu0 %v627_v16 }
  0x23   : > { %658 = vmatpush3.bf16.msra.mxu1 %v655_v5 }
  0x24   : > { %660 = vmatprep.subr.bf16.mxu1 %v659_v20 }
  0x25   : > { %630 = vmatpush3.bf16.msra.mxu0 %v629_v22 }
  0x27   : > { %662 = vmatpush3.bf16.msra.mxu1 %v659_v20 }
  0x28   : > { %339 = vmatmul.mubr.f32.vlgmr.msra.gmra.mrb[0].mxu0 %v220_v27 }
  0x29   : > { %343 = vmatprep.mubr.f32.mxu0 %v224_v30 }
  0x2a   : > { %597 = vmatmul.mubr.f32.vlgmr.msra.gmra.mrb[0].mxu1 %v225_v29 }
  0x2c   : > { %344 = vmatmul.mubr.f32.gmra.mrb[2].mxu0 %v223_v31 }
  0xfb   : > { %v540_v32 = vpop.f32.mrb[0].mxu0 }
  0xfc   : > { %v541_v33 = vpop.f32.mrb[1].mxu0 }
  0xfd   : > { %v598_v34 = vpop.f32.mrb[0].mxu1  ;;  %v542_v35 = vadd.f32 %v541_v33, %v540_v32 }
  0xfe   : > { %v415_v36 = vpop.f32.mrb[1].mxu1 }
  0xff   : > { %v416_v37 = vadd.f32 %v542_v35, %v415_v36  ;;  %v543_v38 = vpop.f32.mrb[2].mxu0 }
 0x100   : > { %v544_v39 = vpop.f32.mrb[3].mxu0 }
 0x101   : > { %425 = vst.msk [vmem:[%s200_s21] sm:$0xff] %vm424_vm0, %v416_v37  ;;  %v545_v40 = vadd.f32 %v544_v39, %v543_v38 }
 0x103   : > { %v421_v41 = vadd.f32 %v598_v34, %v545_v40 }
 0x105   : > { %426 = vst.msk [vmem:[%s200_s21 + $0x8] sm:$0xff] %vm424_vm0, %v421_v41 }
 0x106 PF: > { %s13_s12 = sadd.s32 1, %s678_s12  }
 0x107   : > { %p10_p4 = scmp.ge.s32.totalorder %s13_s12, 4  }
 0x109   :  { %12 = sbr.rel (!%p10_p4) target bundleno = 1 (0x1), region = 65 }

</bundles_post_ra>
